<compile_context>
chip_gen: v5e
topology: v5e:2x2
jax: 0.10.0
libtpu: 0.0.40
codegen_flags: <defaults>
</compile_context>

<pallas_src>
import jax
import jax.numpy as jnp
from jax import lax
from jax.experimental import pallas as pl
from jax.experimental.pallas import tpu as pltpu


def _round_up(v, m):
    return ((v + m - 1) // m) * m


def _embed_kernel(x_ref, w_ref, b_ref, o_ref):
    # x_ref: (row_block, seq_len)   rows = flattened (batch, variate) pairs
    # w_ref: (seq_len, d_model)     VMEM-resident across the whole grid
    # b_ref: (1, d_model)           VMEM-resident, f32
    # o_ref: (row_block, d_model)
    w = w_ref[...]
    acc = jnp.dot(x_ref[...].astype(w.dtype), w,
                  preferred_element_type=jnp.float32)     # MXU, f32 accumulation
    o_ref[...] = (acc + b_ref[...]).astype(o_ref.dtype)
    # TODO(synk): dropout with p > 0 would need pltpu.prng_seed/prng_random_bits
    # masking here; the module default p=0.0 is the identity.


def data_embedding_inverted(x, weight, bias, *, compute_dtype=None,
                            out_dtype=None, row_block=None,
                            vmem_budget_bytes=None):
    """DataEmbedding_inverted forward.

    x: (B, seq_len, n_vars); weight: (d_model, seq_len) [PyTorch nn.Linear
    layout]; bias: (d_model,).  Returns (B, n_vars, d_model) in `out_dtype`
    (defaults to x.dtype).  `compute_dtype` defaults to x.dtype (full
    precision parity); pass jnp.bfloat16 to trade precision for HBM traffic.
    """
    B, seq_len, n_vars = x.shape
    d_model = weight.shape[0]
    compute_dtype = jnp.dtype(x.dtype if compute_dtype is None else compute_dtype)
    out_dtype = jnp.dtype(x.dtype if out_dtype is None else out_dtype)

    M = B * n_vars

    # One-time XLA-side relayout so seq_len lands on the 128-lane axis.  The
    # reshape after the transpose merges leading dims of a contiguous array
    # (free); an optional downcast fuses into the same pass.
    x2 = jnp.transpose(x, (0, 2, 1)).reshape(M, seq_len)
    if x2.dtype != compute_dtype:
        x2 = x2.astype(compute_dtype)
    w = jnp.transpose(weight, (1, 0)).astype(compute_dtype)   # (seq_len, d_model)
    b2d = bias.reshape(1, d_model).astype(jnp.float32)        # (1, d_model)

    cd_item = compute_dtype.itemsize
    o_item = out_dtype.itemsize
    lane_seq = _round_up(seq_len, 128)           # lane padding of the x block
    lane_dm = _round_up(d_model, 128)            # lane padding of w / bias / out
    # Sublane alignment: 8 for 32-bit, 16 for bf16 blocks.
    row_align = max(8, (8 * 4) // min(cd_item, o_item))

    # --- Padding-aware VMEM budget, derived from the actual chip.
    if vmem_budget_bytes is None:
        try:
            phys = pltpu.get_tpu_info().vmem_capacity_bytes
        except Exception:
            phys = 64 * 1024 * 1024              # v7x physical VMEM (smallest gen)
        # ~65% of physical: <=~42 MiB on v7x (64 MiB), <=~83 MiB on v5e/v6e (128 MiB).
        vmem_budget_bytes = min(int(phys * 0.65), 96 * 1024 * 1024)

    # Resident params (constant index_map, but allocated double-buffered).
    resident = (2 * _round_up(seq_len, 8) * lane_dm * cd_item     # weight
                + 2 * 8 * lane_dm * 4)                            # bias
    # Bytes per row of one pipeline buffer (x-block row + out-block row).
    per_row = lane_seq * cd_item + lane_dm * o_item

    if row_block is None:
        slack = 2 * 1024 * 1024                  # compiler-internal scratch headroom
        avail = max(vmem_budget_bytes - resident - slack, 512 * 1024)
        tm_total = avail // (2 * per_row)        # x & out blocks are double-buffered
        tm_target = (6 * 1024 * 1024) // per_row # ~6 MiB / pipeline buffer
        row_block = int(min(tm_total, tm_target))

    row_block = max(row_align, (row_block // row_align) * row_align)
    if M >= 2 * row_align:
        # Keep >= 2 grid steps so ("parallel",) can split across v7x's 2 TCs.
        row_block = min(row_block, _round_up(pl.cdiv(M, 2), row_align))
    if row_block >= M:
        row_block = M                            # single full block

    grid = (pl.cdiv(M, row_block),)

    footprint = resident + 2 * row_block * per_row + 2 * 1024 * 1024
    vmem_limit = int(min(max(footprint, 16 * 1024 * 1024), vmem_budget_bytes))

    cost = pl.CostEstimate(
        flops=2 * M * seq_len * d_model,
        transcendentals=0,
        bytes_accessed=(M * seq_len * cd_item
                        + seq_len * d_model * cd_item
                        + d_model * 4
                        + M * d_model * o_item))

    out2 = pl.pallas_call(
        _embed_kernel,
        out_shape=jax.ShapeDtypeStruct((M, d_model), out_dtype),
        grid_spec=pltpu.PrefetchScalarGridSpec(
            num_scalar_prefetch=0,
            grid=grid,
            in_specs=[
                # x rows: lane-dense (seq_len on lanes), tiled over M.
                pl.BlockSpec((row_block, seq_len), lambda i: (i, 0)),
                # Weight & bias: constant index_map -> VMEM-resident across grid.
                pl.BlockSpec((seq_len, d_model), lambda i: (0, 0)),
                pl.BlockSpec((1, d_model), lambda i: (0, 0)),
            ],
            out_specs=pl.BlockSpec((row_block, d_model), lambda i: (i, 0)),
        ),
        compiler_params=pltpu.CompilerParams(
            dimension_semantics=("parallel",),
            vmem_limit_bytes=vmem_limit),
        cost_estimate=cost,
    )(x2, w, b2d)

    return out2.reshape(B, n_vars, d_model)


if __name__ == "__main__":
    # Small shapes consistent with the module's forward.
    B, seq_len, n_vars, d_model = 4, 32, 8, 128

    key = jax.random.PRNGKey(0)
    kx, kw, kb = jax.random.split(key, 3)

    x = jax.random.normal(kx, (B, seq_len, n_vars), dtype=jnp.float32)

    # nn.Linear default init: uniform(-1/sqrt(seq_len), 1/sqrt(seq_len)).
    bound = 1.0 / (seq_len ** 0.5)
    weight = jax.random.uniform(kw, (d_model, seq_len),
                                minval=-bound, maxval=bound, dtype=jnp.float32)
    bias = jax.random.uniform(kb, (d_model,),
                              minval=-bound, maxval=bound, dtype=jnp.float32)

    # Default path: full-precision parity with the PyTorch module.
    out = data_embedding_inverted(x, weight, bias)
    out = jax.block_until_ready(out)
    assert out.shape == (B, n_vars, d_model)
    assert out.dtype == x.dtype

    ref = jnp.einsum("bln,dl->bnd", x, weight,
                     precision=lax.Precision.HIGHEST) + bias
    assert jnp.allclose(out.astype(jnp.float32), ref, atol=1e-2, rtol=1e-2), (
        float(jnp.max(jnp.abs(out.astype(jnp.float32) - ref))))

    # Optional reduced-precision path (halves weight/x/out HBM traffic).
    out_bf = data_embedding_inverted(x, weight, bias,
                                     compute_dtype=jnp.bfloat16,
                                     out_dtype=jnp.bfloat16)
    out_bf = jax.block_until_ready(out_bf)
    assert out_bf.shape == (B, n_vars, d_model)
    assert jnp.allclose(out_bf.astype(jnp.float32), ref, atol=3e-2, rtol=3e-2), (
        float(jnp.max(jnp.abs(out_bf.astype(jnp.float32) - ref))))

    print("KERNEL_OK")
</pallas_src>

<mosaic_0001>
module attributes {stable_mosaic.version = 11 : i64} {
  func.func @_embed_kernel(%arg0: i32, %arg1: memref<16x32xf32, #tpu.memory_space<vmem>>, %arg2: memref<32x128xf32, #tpu.memory_space<vmem>>, %arg3: memref<1x128xf32, #tpu.memory_space<vmem>>, %arg4: memref<16x128xf32, #tpu.memory_space<vmem>>) attributes {dimension_semantics = [#tpu.dimension_semantics<parallel>], iteration_bounds = array<i64: 2>, scalar_prefetch = 0 : i64, scratch_operands = 0 : i64, tpu.core_type = #tpu.core_type<tc>, window_params = [{transform_indices = @transform_0, window_bounds = array<i64: 16, 32>}, {pipeline_mode = #tpu.pipeline_mode<synchronous>, transform_indices = @transform_1, window_bounds = array<i64: 32, 128>}, {pipeline_mode = #tpu.pipeline_mode<synchronous>, transform_indices = @transform_2, window_bounds = array<i64: 1, 128>}, {transform_indices = @transform_3, window_bounds = array<i64: 16, 128>}]} {
    %c0 = arith.constant 0 : index
    %c0_0 = arith.constant 0 : index
    %0 = vector.load %arg2[%c0, %c0_0] : memref<32x128xf32, #tpu.memory_space<vmem>>, vector<32x128xf32>
    %c0_1 = arith.constant 0 : index
    %c0_2 = arith.constant 0 : index
    %1 = vector.load %arg1[%c0_1, %c0_2] : memref<16x32xf32, #tpu.memory_space<vmem>>, vector<16x32xf32>
    %cst = arith.constant dense<0.000000e+00> : vector<16x128xf32>
    %2 = tpu.matmul %1, %0, %cst {dimension_numbers = #tpu.dot_dimension_numbers<[1], [0], [0], [1], [0, 0, 1, 1], [], []>} : vector<16x32xf32>, vector<32x128xf32>, vector<16x128xf32> -> vector<16x128xf32>
    %c0_3 = arith.constant 0 : index
    %c0_4 = arith.constant 0 : index
    %3 = vector.load %arg3[%c0_3, %c0_4] : memref<1x128xf32, #tpu.memory_space<vmem>>, vector<1x128xf32>
    %4 = vector.broadcast %3 : vector<1x128xf32> to vector<16x128xf32>
    %5 = arith.addf %2, %4 : vector<16x128xf32>
    %c0_5 = arith.constant 0 : index
    %c0_6 = arith.constant 0 : index
    %6 = vector.load %arg4[%c0_5, %c0_6] : memref<16x128xf32, #tpu.memory_space<vmem>>, vector<16x128xf32>
    tpu.vector_store %arg4[%c0_5, %c0_6], %5 {strides = array<i32>} : memref<16x128xf32, #tpu.memory_space<vmem>>, vector<16x128xf32>,
    return
  }
  func.func @transform_0(%arg0: i32) -> (i32, i32) {
    %c0_i32 = arith.constant 0 : i32
    %c0_i32_0 = arith.constant 0 : i32
    return %arg0, %c0_i32 : i32, i32
  }
  func.func @transform_1(%arg0: i32) -> (i32, i32) {
    %c0_i32 = arith.constant 0 : i32
    %c0_i32_0 = arith.constant 0 : i32
    %c0_i32_1 = arith.constant 0 : i32
    return %c0_i32, %c0_i32_0 : i32, i32
  }
  func.func @transform_2(%arg0: i32) -> (i32, i32) {
    %c0_i32 = arith.constant 0 : i32
    %c0_i32_0 = arith.constant 0 : i32
    %c0_i32_1 = arith.constant 0 : i32
    return %c0_i32, %c0_i32_0 : i32, i32
  }
  func.func @transform_3(%arg0: i32) -> (i32, i32) {
    %c0_i32 = arith.constant 0 : i32
    %c0_i32_0 = arith.constant 0 : i32
    return %arg0, %c0_i32 : i32, i32
  }
}

</mosaic_0001>

<bundles_post_ra>
// kernel: tpu_custom_call.1
= control target key start
LH: loop header
LB: loop body
LE: loop exit
PB: predicated region body
PF: predicated region fallthrough
CT: control target
= control target key end

     0   :  { %8 = vsyncpa [#allocation3], 0  ;;  %s741_s0 = inlined_call_operand.hbm [shape: f32[32,32], index: 0, kind: input, shape index: {}]   ;;  %s742_s1 = inlined_call_operand.hbm [shape: f32[32,128], index: 1, kind: input, shape index: {}]   ;;  %s743_s2 = inlined_call_operand.vmem [shape: f32[1,128], index: 2, kind: input, shape index: {}]   ;;  %s744_s3 = inlined_call_operand.hbm [shape: f32[32,128], index: 3, kind: output, shape index: {}]  }
   0x1   :  { %10 = vsyncpa [#allocation3 + $0x1], 0 }
   0x2   :  { %11 = vsyncpa [#allocation6], 0 }
   0x3   :  { %12 = vsyncpa [#allocation4], 0 }
   0x4   :  { %14 = vsyncpa [#allocation4 + $0x1], 0  ;;  %s594_s12 = smov 0   ;;  %s596_s13 = smov 0  }
   0x5   :  { %s598_s14 = smov 0   ;;  %s600_s15 = smov 0  }
   0x6 LB: > { %s615_s16 = sadd.s32 4294967295, %s567_s15   ;;  %s351_s17 = sadd.s32 4294967294, %s567_s15   ;;  %s567_s15 = sphi %s600_s15, %s754_s15   ;;  %s563_s14 = sphi %s598_s14, %s753_s14   ;;  %s559_s13 = sphi %s596_s13, %s752_s13   ;;  %s555_s12 = sphi %s594_s12, %s751_s12  }
   0x7   : > { %p40_p0 = scmp.ne.s32.totalorder %s559_s13, %s555_s12  ;;  %p41_p1 = scmp.eq.s32.totalorder %s615_s16, 0 }
   0x8   : > { %p106_p2 = scmp.eq.s32.totalorder %s615_s16, 1  ;;  %p112_p3 = scmp.eq.s32.totalorder %s351_s17, 1 }
   0x9   : > { %p624_p4 = por %p41_p1, %p40_p0  ;;  %p352_p5 = scmp.ge.s32.totalorder %s567_s15, 1 }
   0xa   : > { %p629_p6 = por %p112_p3, %p40_p0  ;;  %p119_p7 = scmp.lt.s32.totalorder %s567_s15, 3 }
   0xb   : > { %s130_s22 = sshll.u32 %s742_s1, 4  ;;  %s569_s24 = smov [#allocation5]   ;;  %s131_s22 = int_to_ptr.hbm [resolvable:$true] %s130_s22 }
   0xc   : > { %p637_p8 = pnand %p352_p5, %p119_p7  ;;  %s132_s25 = sshll.u32 %s569_s24, 4  ;;  %s133_s25 = int_to_ptr.vmem [resolvable:$true] %s132_s25 }
   0xd   : > { %s647_s26 = sadd.s32 1, %s567_s15   ;;  %s570_s27 = smov 128  }
   0xe   : > { %p383_p9 = pneg %p637_p8  ;;  %s571_s28 = smov 8  }
   0xf   : > { %s24_s29 = ssub.s32 %s567_s15, %s647_s26  ;;  %s27_s30 = sadd.s32 1, %s563_s14 }
  0x10   : > { %p384_p10 = pnand %p383_p9, %p41_p1  ;;  %p25_p12 = scmp.eq.s32.totalorder %s24_s29, 0 }
  0x11   : > { %p34_p13 = scmp.ne.s32.totalorder %s563_s14, %s559_s13  ;;  %p35_p0 = scmp.eq.s32.totalorder %s567_s15, 0 }
  0x12   : > { %386 = dma.hbm_to_vmem [thread:$0]  (!%p384_p10), %s131_s22, 512, %s133_s25, [#allocation6], %s570_s27, %s570_s27, %s571_s28  }
  0x13   : > { %s659_s4 = scalar_select %p25_p12, %s563_s14, %s27_s30  }
  0x14   : > { %p663_p3 = por %p106_p2, %p34_p13  ;;  %p396_p5 = scmp.lt.s32.totalorder %s567_s15, 2 }
  0x15   : > { %s149_s6 = sand.u32 1, %s563_s14   ;;  %s369_s7 = sshll.u32 %s567_s15, 4 }
  0x16   : > { %p36_p7 = por %p35_p0, %p34_p13  ;;  %s355_s8 = sshll.u32 %s149_s6, 4 }
  0x17   : > { %s158_s11 = scalar_lea.hbm %s741_s0, %s369_s7  ;;  %s153_s20 = scalar_lea.vmem [#allocation2], %s355_s8 }
  0x18   : > { %s159_s17 = sshll.u32 %s158_s11, 4  ;;  %s161_s21 = sshll.u32 %s153_s20, 4  ;;  %s160_s17 = int_to_ptr.hbm [resolvable:$true] %s159_s17  ;;  %s162_s21 = int_to_ptr.vmem [resolvable:$true] %s161_s21 }
  0x19   : > { %p673_p9 = pnand %p396_p5, %p36_p7  ;;  %s150_s24 = scalar_lea.sflag [#allocation3], %s149_s6 }
  0x1a   : > { %s467_s25 = sshra.s32 %s160_s17, 4  ;;  %s474_s8 = scalar_lea.hbm %s741_s0, 32  ;;  %s468_s25 = int_to_ptr.hbm [resolvable:$true] %s467_s25 }
  0x1b   : > { %s469_s29 = scalar_lea.hbm %s468_s25, 16  ;;  %p471_p10 = pneg %p673_p9 }
  0x1c   : > { %p470_p2 = scmp.ne.s32.totalorder %s468_s25, %s469_s29  ;;  %p475_p0 = scmp.lt.s32.totalorder %s468_s25, %s741_s0 }
  0x1d   : > { %p476_p5 = scmp.lt.s32.totalorder %s474_s8, %s469_s29 }
  0x1e   : > { %p472_p12 = pnand %p471_p10, %p470_p2 }
  0x1f   : > { %p477_p7 = por %p476_p5, %p475_p0 }
  0x20   : > { %p473_p13 = pneg %p472_p12 }
  0x22   : > { %p478_p11 = pnand %p477_p7, %p473_p13 }
  0x24   : > { %481 = shalt.err (!%p478_p11)
}
  0x25   : > { %390 = dma.hbm_to_vmem [thread:$0]  (!%p673_p9), %s160_s17, 256, %s162_s21, %s150_s24, %s570_s27, %s570_s27, %s571_s28  }
  0x26   : > { %173 = sbr.rel (%p637_p8) target bundleno = 187 (0xbb), region = 32  ;;  %s693_s6 = sand.u32 (!%p637_p8), 1, %s559_s13  }
  0x27   : > { %s359_s11 = sshll.u32 (!%p637_p8), %s693_s6, 4  ;;  %s176_s20 = scalar_lea.sflag (!%p637_p8), [#allocation3], %s693_s6 }
  0x28   : > { %s179_s25 = scalar_lea.vmem (!%p637_p8), [#allocation2], %s359_s11 }
  0x2b   : > { %542 = dma.done.wait (%p624_p4), %s176_s20, 256  }
  0x2c   : > { %544 = vsyncadd (%p624_p4), %s176_s20, 4294967040 }
  0x2d   : > { %546 = dma.done.wait (%p41_p1), [#allocation6], 512  }
  0x2e   : > { %548 = vsyncadd (%p41_p1), [#allocation6], 4294966784  ;;  %v213_v0 = vld [vmem:[#allocation5 + $0x18] sm:$0xff]  ;;  %v212_v1 = vld [vmem:[#allocation5 + $0x10] sm:$0xff]  ;;  %vm220_vm0 = vcmask 261120   ;;  %s370_s18 = sshll.u32 %s615_s16, 4 }
  0x2f   : > { %239 = vmatpush.msra.mxu0 %v213_v0  ;;  %371 = vmatpush.msra.mxu1 %v213_v0  ;;  %v211_v2 = vld [vmem:[#allocation5 + $0x8] sm:$0xff]  ;;  %v210_v3 = vld [vmem:[#allocation5] sm:$0xff]  ;;  %s264_s28 = scalar_lea.hbm %s744_s3, %s370_s18  ;;  %s207_s22 = scalar_lea.vmem [#allocation7], %s359_s11 }
  0x30   : > { %v214_v4 = vld [vmem:[%s179_s25] sm:$0xff]  ;;  %v215_v5 = vld [vmem:[%s179_s25 + $0x8] sm:$0xff]  ;;  %s265_s24 = sshll.u32 %s207_s22, 4  ;;  %s267_s29 = sshll.u32 %s264_s28, 4  ;;  %s266_s24 = int_to_ptr.vmem [resolvable:$true] %s265_s24  ;;  %s268_s29 = int_to_ptr.hbm [resolvable:$true] %s267_s29 }
  0x31   : > { %240 = vmatpush.msra.mxu0 %v212_v1  ;;  %372 = vmatpush.msra.mxu1 %v212_v1  ;;  %v436_v6 = vld [vmem:[%s743_s2] ss:$0 sm:$0xff]  ;;  %s253_s16 = scalar_lea.sflag [#allocation4], %s693_s6  ;;  %s511_s30 = sshra.s32 %s268_s29, 4  ;;  %s512_s30 = int_to_ptr.hbm [resolvable:$true] %s511_s30 }
  0x32   : > { %s513_s7 = scalar_lea.hbm %s512_s30, 16  ;;  %s517_s10 = scalar_lea.hbm %s744_s3, 32 }
  0x33   : > { %241 = vmatpush.msra.mxu0 %v211_v2  ;;  %373 = vmatpush.msra.mxu1 %v211_v2  ;;  %p514_p1 = scmp.ne.s32.totalorder %s512_s30, %s513_s7  ;;  %p518_p11 = scmp.lt.s32.totalorder %s512_s30, %s744_s3 }
  0x34   : > { %p519_p9 = scmp.lt.s32.totalorder %s517_s10, %s513_s7 }
  0x35   : > { %242 = vmatpush.msra.mxu0 %v210_v3  ;;  %374 = vmatpush.msra.mxu1 %v210_v3  ;;  %p515_p4 = pnand %p514_p1, %p663_p3 }
  0x36   : > { %362 = vmatmul.msk.f32.vlgmr.msra.gmra.mxu0 %vm220_vm0, %v214_v4  ;;  %363 = vmatmul.msk.f32.vlgmr.msra.gmra.mxu1 %vm220_vm0, %v215_v5  ;;  %p520_p2 = por %p519_p9, %p518_p11 }
  0x37   : > { %p516_p8 = pneg %p515_p4 }
  0x39   : > { %p521_p10 = pnand %p520_p2, %p516_p8 }
  0xb3   : > { %v244_v7 = vpop.f32.mrf.mxu0  ;;  %v247_v8 = vpop.f32.mrf.mxu1 }
  0xb4   : > { %v245_v9 = vadd.f32 %v436_v6, %v244_v7  ;;  %v248_v10 = vadd.f32 %v436_v6, %v247_v8 }
  0xb6   : > { %250 = vst [vmem:[%s207_s22] sm:$0xff] %v245_v9 }
  0xb7   : > { %251 = vst [vmem:[%s207_s22 + $0x8] sm:$0xff] %v248_v10 }
  0xb8   : > { %524 = shalt.err (!%p521_p10)
}
  0xb9   : > { %s572_s6 = smov 128   ;;  %s573_s25 = smov 8  }
  0xba   : > { %381 = dma.vmem_to_hbm [thread:$0]  (%p663_p3), %s266_s24, 256, %s268_s29, %s253_s16, %s572_s6, %s572_s6, %s573_s25  }
  0xbb PF: > { %s282_s18 = sand.u32 1, %s555_s12   ;;  %p750_p12 = scmp.ge.s32.totalorder %s567_s15, 2 }
  0xbc   : > { %s283_s23 = scalar_lea.sflag [#allocation4], %s282_s18 }
  0xbd   : > { %p392_p13 = pnand %p750_p12, %p629_p6 }
  0xbf   : > { %p393_p0 = pneg %p392_p13 }
  0xc1   : > { %550 = dma.done.wait (%p393_p0), %s283_s23, 256  }
  0xc2   : > { %552 = vsyncadd (%p393_p0), %s283_s23, 4294967040  ;;  %p17_p5 = scmp.ge.s32.totalorder %s647_s26, 4   ;;  %s751_s12 = smov %s559_s13 }
  0xc3   : > { %s752_s13 = smov %s563_s14  ;;  %s753_s14 = smov %s659_s4 }
  0xc4   : > { %s754_s15 = smov %s647_s26  ;;  %19 = sbr.rel (!%p17_p5) target bundleno = 6 (0x6), region = 81 }
  0xc9   :  { %289 = vsyncpa [#allocation3], 1 }
  0xca   :  { %291 = vsyncpa [#allocation3 + $0x1], 1 }
  0xcb   :  { %292 = vsyncpa [#allocation6], 1 }
  0xcc   :  { %293 = vsyncpa [#allocation4], 1 }
  0xcd   :  { %295 = vsyncpa [#allocation4 + $0x1], 1 }

</bundles_post_ra>
